<compile_context>
chip_gen: v6e
topology: v6e:2x2x1
jax: 0.10.0
libtpu: 0.0.40
codegen_flags: <defaults>
</compile_context>

<pallas_src>
import functools

import jax
import jax.numpy as jnp
from jax.experimental import pallas as pl
from jax.experimental.pallas import tpu as pltpu


# ------------------------------- kernels -------------------------------------


def _qkv_kernel(x_ref, wq_ref, wk_ref, wv_ref, bq_ref, bk_ref, bv_ref,
                sq_ref, ek_ref, ekv_ref, *, bt, tr, d):
    """Projection + elementwise prep for one (bt, tr) block; outputs are written in the
    batch-folded layout (1, tr, bt*d)."""
    # (bt, tr, d) -> (bt*tr, d): one MXU matmul per projection instead of bt small ones.
    x2 = x_ref[...].reshape(bt * tr, d)                       # bf16
    q = jnp.dot(x2, wq_ref[...], preferred_element_type=jnp.float32) + bq_ref[...]
    k = jnp.dot(x2, wk_ref[...], preferred_element_type=jnp.float32) + bk_ref[...]
    v = jnp.dot(x2, wv_ref[...], preferred_element_type=jnp.float32) + bv_ref[...]
    sq = jax.nn.sigmoid(q)
    ek = jnp.exp(k)
    ekv = ek * v

    # Fold batch into lanes: rows [b*tr:(b+1)*tr] -> lanes [b*d:(b+1)*d].
    def fold(a):
        return jnp.concatenate([a[b * tr:(b + 1) * tr] for b in range(bt)], axis=-1)

    sq_ref[0] = fold(sq).astype(sq_ref.dtype)
    ek_ref[0] = fold(ek).astype(ek_ref.dtype)
    ekv_ref[0] = fold(ekv).astype(ekv_ref.dtype)


def _reduce_kernel(sq_ref, ek_ref, ekv_ref, ep_ref, o_ref, num_acc, den_acc):
    """Flash-style num/den accumulation over kv tiles; finalize with sigmoid(q)*num/den."""
    ki = pl.program_id(2)

    @pl.when(ki == 0)
    def _():
        num_acc[...] = jnp.zeros_like(num_acc)
        den_acc[...] = jnp.zeros_like(den_acc)

    ep = ep_ref[...]                                          # (tq, tk) bf16
    # One wide-N matmul per accumulator: N = bt*d fills the MXU even at small d.
    num_acc[...] += jnp.dot(ep, ekv_ref[0], preferred_element_type=jnp.float32)
    den_acc[...] += jnp.dot(ep, ek_ref[0], preferred_element_type=jnp.float32)

    @pl.when(ki == pl.num_programs(2) - 1)
    def _():
        # Exact division at finalize (once per q tile -> negligible cost).
        out = sq_ref[0].astype(jnp.float32) * num_acc[...] / den_acc[...]
        o_ref[0] = out.astype(o_ref.dtype)


# --------------------------- tile selection -----------------------------------


def _divisors_desc(size, granule):
    """Divisors of `size` that are multiples of `granule`, plus `size` itself (full
    extent is always layout-legal), descending."""
    cands = {size}
    t = (size // granule) * granule
    while t >= granule:
        if size % t == 0:
            cands.add(t)
        t -= granule
    return sorted(cands, reverse=True)


def _reduce_vmem_bytes(bt, tq, tk, d, out_bytes):
    D = bt * d
    return (2 * 2 * tk * D * 2          # exp(k) + exp(k)*v blocks (bf16, double-buffered)
            + 2 * tq * D * 2            # sigmoid(q) block (bf16, double-buffered)
            + 2 * tq * tk * 2           # exp(pos) block (bf16, double-buffered)
            + 2 * tq * D * out_bytes    # output block (double-buffered)
            + 2 * tq * D * 4)           # num/den f32 accumulators (scratch)


def _proj_vmem_bytes(bt, tr, d):
    D = bt * d
    return (2 * bt * tr * d * 2         # x block (bf16, double-buffered)
            + 3 * 2 * d * d * 2         # Wq/Wk/Wv resident (bf16)
            + 3 * 2 * d * 4             # biases
            + 3 * 2 * tr * D * 2)       # sq/ek/ekv out blocks (bf16, double-buffered)


def _select_reduce_tiles(bs, n, d, budget, out_bytes):
    tq_all = _divisors_desc(n, 8)
    tq_cands = [t for t in tq_all if t <= 512] or [tq_all[-1]]
    # tk is the lane dim of exp(pos) and the matmul contraction dim: multiples of 128
    # only (or full extent n, which is always legal).
    tk_cands = _divisors_desc(n, 128)
    bt_cands = [b for b in range(min(bs, 8), 0, -1) if bs % b == 0]
    # Preference: kv-resident (tk = n) > wide MXU N (large bt*d) > large tq.
    for tk in tk_cands:
        for bt in bt_cands:
            for tq in tq_cands:
                if _reduce_vmem_bytes(bt, tq, tk, d, out_bytes) <= budget:
                    return bt, tq, tk
    return 1, tq_cands[-1], tk_cands[-1]


def _select_proj_rows(n, bt, d, budget):
    tr_all = _divisors_desc(n, 8)
    tr_cands = [t for t in tr_all if t <= 512] or [tr_all[-1]]
    for tr in tr_cands:
        if _proj_vmem_bytes(bt, tr, d) <= budget:
            return tr
    return tr_cands[-1]


# ------------------------------- wrappers -------------------------------------


def _qkv_project(x_bf, wq, wk, wv, bq2, bk2, bv2, *, bt, tr, vmem_limit):
    bs, n, d = x_bf.shape
    G = bs // bt
    D = bt * d
    kernel = functools.partial(_qkv_kernel, bt=bt, tr=tr, d=d)
    flops = 3 * 2 * bs * n * d * d
    bytes_accessed = bs * n * d * 2 + 3 * d * d * 2 + 3 * d * 4 + 3 * bs * n * d * 2
    return pl.pallas_call(
        kernel,
        out_shape=(
            jax.ShapeDtypeStruct((G, n, D), jnp.bfloat16),   # sigmoid(q)
            jax.ShapeDtypeStruct((G, n, D), jnp.bfloat16),   # exp(k)
            jax.ShapeDtypeStruct((G, n, D), jnp.bfloat16),   # exp(k) * v
        ),
        grid_spec=pltpu.PrefetchScalarGridSpec(
            num_scalar_prefetch=0,
            grid=(G, n // tr),
            in_specs=[
                pl.BlockSpec((bt, tr, d), lambda g, r: (g, r, 0)),   # x (bf16)
                pl.BlockSpec((d, d), lambda g, r: (0, 0)),           # Wq (resident)
                pl.BlockSpec((d, d), lambda g, r: (0, 0)),           # Wk (resident)
                pl.BlockSpec((d, d), lambda g, r: (0, 0)),           # Wv (resident)
                pl.BlockSpec((1, d), lambda g, r: (0, 0)),           # bq
                pl.BlockSpec((1, d), lambda g, r: (0, 0)),           # bk
                pl.BlockSpec((1, d), lambda g, r: (0, 0)),           # bv
            ],
            out_specs=(
                pl.BlockSpec((1, tr, D), lambda g, r: (g, r, 0)),
                pl.BlockSpec((1, tr, D), lambda g, r: (g, r, 0)),
                pl.BlockSpec((1, tr, D), lambda g, r: (g, r, 0)),
            ),
        ),
        compiler_params=pltpu.CompilerParams(
            dimension_semantics=("parallel", "parallel"),
            vmem_limit_bytes=vmem_limit),
        cost_estimate=pl.CostEstimate(
            flops=int(flops), transcendentals=int(2 * bs * n * d),
            bytes_accessed=int(bytes_accessed)),
    )(x_bf, wq, wk, wv, bq2, bk2, bv2)


def _aft_reduce(sq, ek, ekv, exp_pos, *, bt, tq, tk, out_dtype, vmem_limit):
    G, n, D = sq.shape
    d = D // bt
    bs = G * bt
    flops = 4 * bs * n * n * d
    bytes_accessed = (3 * G * n * D * 2 + n * n * 2
                      + G * n * D * jnp.dtype(out_dtype).itemsize)
    return pl.pallas_call(
        _reduce_kernel,
        out_shape=jax.ShapeDtypeStruct((G, n, D), out_dtype),
        grid_spec=pltpu.PrefetchScalarGridSpec(
            num_scalar_prefetch=0,
            grid=(G, n // tq, n // tk),
            in_specs=[
                pl.BlockSpec((1, tq, D), lambda g, qi, ki: (g, qi, 0)),  # sigmoid(q)
                pl.BlockSpec((1, tk, D), lambda g, qi, ki: (g, ki, 0)),  # exp(k)
                pl.BlockSpec((1, tk, D), lambda g, qi, ki: (g, ki, 0)),  # exp(k)*v
                pl.BlockSpec((tq, tk), lambda g, qi, ki: (qi, ki)),      # exp(pos)
            ],
            out_specs=pl.BlockSpec((1, tq, D), lambda g, qi, ki: (g, qi, 0)),
            scratch_shapes=[
                pltpu.VMEM((tq, D), jnp.float32),   # numerator accumulator
                pltpu.VMEM((tq, D), jnp.float32),   # denominator accumulator
            ],
        ),
        compiler_params=pltpu.CompilerParams(
            dimension_semantics=("parallel", "parallel", "arbitrary"),
            vmem_limit_bytes=vmem_limit),
        cost_estimate=pl.CostEstimate(
            flops=int(flops), transcendentals=0, bytes_accessed=int(bytes_accessed)),
    )(sq, ek, ekv, exp_pos)


def aft_full_pallas(x, Wq, bq, Wk, bk, Wv, bv, pos):
    """x: (bs, n, d). Wq/Wk/Wv: PyTorch layout (d_out, d_in). bq/bk/bv: (d,).
    pos: (n, n) position_biases. Returns (bs, n, d) in x.dtype."""
    bs, n, d = x.shape

    # Generation-aware VMEM budget (v7x: 64 MiB, v5e/v6e: 128 MiB).
    try:
        vmem_cap = int(pltpu.get_tpu_info().vmem_capacity_bytes)
    except Exception:  # pragma: no cover - conservative fallback
        vmem_cap = 64 << 20
    budget = int(vmem_cap * 0.55)       # working-set target; leaves pipelining headroom
    vmem_limit = int(vmem_cap * 0.90)   # explicit scoped-VMEM limit for both kernels

    out_dtype = x.dtype
    out_bytes = jnp.dtype(out_dtype).itemsize
    bt, tq, tk = _select_reduce_tiles(bs, n, d, budget, out_bytes)
    tr = _select_proj_rows(n, bt, d, budget)
    G = bs // bt
    # NOTE (v7x megacore): if G == 1 and n // tq < 2, both parallel axes collapse and one
    # TensorCore idles; at realistic shapes the tile search keeps n // tq >= 2.

    # bf16 operands for the MXU (all accumulation stays f32 inside the kernels).
    x_bf = x.astype(jnp.bfloat16)
    wq = Wq.T.astype(jnp.bfloat16)
    wk = Wk.T.astype(jnp.bfloat16)
    wv = Wv.T.astype(jnp.bfloat16)
    bq2 = bq.reshape(1, d).astype(jnp.float32)
    bk2 = bk.reshape(1, d).astype(jnp.float32)
    bv2 = bv.reshape(1, d).astype(jnp.float32)

    # exp(position_biases) hoisted out of the grid; exact per-row max subtraction
    # cancels in num/den and guards overflow from large biases.
    exp_pos = jnp.exp(pos - jnp.max(pos, axis=1, keepdims=True)).astype(jnp.bfloat16)

    sq, ek, ekv = _qkv_project(x_bf, wq, wk, wv, bq2, bk2, bv2,
                               bt=bt, tr=tr, vmem_limit=vmem_limit)
    out_folded = _aft_reduce(sq, ek, ekv, exp_pos, bt=bt, tq=tq, tk=tk,
                             out_dtype=out_dtype, vmem_limit=vmem_limit)

    # Unfold the batch-in-lanes layout: (G, n, bt*d) -> (bs, n, d).
    return (out_folded.reshape(G, n, bt, d)
            .transpose(0, 2, 1, 3)
            .reshape(bs, n, d))


# ------------------------------- reference ------------------------------------


def aft_full_reference(x, Wq, bq, Wk, bk, Wv, bv, pos):
    """Pure-JAX transcription of the PyTorch forward (for validation)."""
    bs, n, d = x.shape
    q = x @ Wq.T + bq
    k = (x @ Wk.T + bk).reshape(1, bs, n, d)
    v = (x @ Wv.T + bv).reshape(1, bs, n, d)
    w = jnp.exp(k + pos.reshape(n, 1, n, 1))          # (n, bs, n, d)
    numerator = jnp.sum(w * v, axis=2)                # (n, bs, d)
    denominator = jnp.sum(w, axis=2)                  # (n, bs, d)
    out = numerator / denominator
    return jax.nn.sigmoid(q) * jnp.transpose(out, (1, 0, 2))


if __name__ == "__main__":
    # Small shapes consistent with the module: (bs, n, d_model)
    bs, n, d_model = 2, 8, 32

    key = jax.random.PRNGKey(0)
    kx, kq, kk, kv = jax.random.split(key, 4)

    x = jax.random.normal(kx, (bs, n, d_model), dtype=jnp.float32)

    # Parameter init mirroring AFT_FULL.init_weights:
    #   nn.Linear weights ~ Normal(std=0.001), biases = 0
    #   position_biases = ones((n, n))  (non-simple path)
    Wq = 0.001 * jax.random.normal(kq, (d_model, d_model), dtype=jnp.float32)
    Wk = 0.001 * jax.random.normal(kk, (d_model, d_model), dtype=jnp.float32)
    Wv = 0.001 * jax.random.normal(kv, (d_model, d_model), dtype=jnp.float32)
    bq = jnp.zeros((d_model,), dtype=jnp.float32)
    bk = jnp.zeros((d_model,), dtype=jnp.float32)
    bv = jnp.zeros((d_model,), dtype=jnp.float32)
    pos = jnp.ones((n, n), dtype=jnp.float32)

    out = aft_full_pallas(x, Wq, bq, Wk, bk, Wv, bv, pos)
    out = jax.block_until_ready(out)

    ref = aft_full_reference(x, Wq, bq, Wk, bk, Wv, bv, pos)

    assert out.shape == (bs, n, d_model)
    max_err = float(jnp.max(jnp.abs(out - ref)))
    # bf16 MXU inputs => compare with a mixed-precision tolerance.
    assert jnp.allclose(out, ref, atol=2e-3, rtol=2e-2), f"max abs err = {max_err}"
    print("KERNEL_OK")
</pallas_src>

<mosaic_0001>
module attributes {stable_mosaic.version = 11 : i64} {
  func.func @_qkv_kernel(%arg0: i32, %arg1: i32, %arg2: memref<2x8x32xbf16, #tpu.memory_space<vmem>>, %arg3: memref<32x32xbf16, #tpu.memory_space<vmem>>, %arg4: memref<32x32xbf16, #tpu.memory_space<vmem>>, %arg5: memref<32x32xbf16, #tpu.memory_space<vmem>>, %arg6: memref<1x32xf32, #tpu.memory_space<vmem>>, %arg7: memref<1x32xf32, #tpu.memory_space<vmem>>, %arg8: memref<1x32xf32, #tpu.memory_space<vmem>>, %arg9: memref<1x8x64xbf16, #tpu.memory_space<vmem>>, %arg10: memref<1x8x64xbf16, #tpu.memory_space<vmem>>, %arg11: memref<1x8x64xbf16, #tpu.memory_space<vmem>>) attributes {dimension_semantics = [#tpu.dimension_semantics<parallel>, #tpu.dimension_semantics<parallel>], iteration_bounds = array<i64: 1, 1>, scalar_prefetch = 0 : i64, scratch_operands = 0 : i64, tpu.core_type = #tpu.core_type<tc>, window_params = [{transform_indices = @transform_0, window_bounds = array<i64: 2, 8, 32>}, {pipeline_mode = #tpu.pipeline_mode<synchronous>, transform_indices = @transform_1, window_bounds = array<i64: 32, 32>}, {pipeline_mode = #tpu.pipeline_mode<synchronous>, transform_indices = @transform_2, window_bounds = array<i64: 32, 32>}, {pipeline_mode = #tpu.pipeline_mode<synchronous>, transform_indices = @transform_3, window_bounds = array<i64: 32, 32>}, {pipeline_mode = #tpu.pipeline_mode<synchronous>, transform_indices = @transform_4, window_bounds = array<i64: 1, 32>}, {pipeline_mode = #tpu.pipeline_mode<synchronous>, transform_indices = @transform_5, window_bounds = array<i64: 1, 32>}, {pipeline_mode = #tpu.pipeline_mode<synchronous>, transform_indices = @transform_6, window_bounds = array<i64: 1, 32>}, {transform_indices = @transform_7, window_bounds = array<i64: 1, 8, 64>}, {transform_indices = @transform_8, window_bounds = array<i64: 1, 8, 64>}, {transform_indices = @transform_9, window_bounds = array<i64: 1, 8, 64>}]} {
    %c0 = arith.constant 0 : index
    %c0_0 = arith.constant 0 : index
    %c0_1 = arith.constant 0 : index
    %0 = vector.load %arg2[%c0, %c0_0, %c0_1] : memref<2x8x32xbf16, #tpu.memory_space<vmem>>, vector<2x8x32xbf16>
    %1 = vector.shape_cast %0 : vector<2x8x32xbf16> to vector<16x32xbf16>
    %c0_2 = arith.constant 0 : index
    %c0_3 = arith.constant 0 : index
    %2 = vector.load %arg3[%c0_2, %c0_3] : memref<32x32xbf16, #tpu.memory_space<vmem>>, vector<32x32xbf16>
    %cst = arith.constant dense<0.000000e+00> : vector<16x32xf32>
    %3 = tpu.matmul %1, %2, %cst {dimension_numbers = #tpu.dot_dimension_numbers<[1], [0], [0], [1], [0, 0, 1, 1], [], []>} : vector<16x32xbf16>, vector<32x32xbf16>, vector<16x32xf32> -> vector<16x32xf32>
    %c0_4 = arith.constant 0 : index
    %c0_5 = arith.constant 0 : index
    %4 = vector.load %arg6[%c0_4, %c0_5] : memref<1x32xf32, #tpu.memory_space<vmem>>, vector<1x32xf32>
    %5 = vector.broadcast %4 : vector<1x32xf32> to vector<16x32xf32>
    %6 = arith.addf %3, %5 : vector<16x32xf32>
    %c0_6 = arith.constant 0 : index
    %c0_7 = arith.constant 0 : index
    %7 = vector.load %arg4[%c0_6, %c0_7] : memref<32x32xbf16, #tpu.memory_space<vmem>>, vector<32x32xbf16>
    %cst_8 = arith.constant dense<0.000000e+00> : vector<16x32xf32>
    %8 = tpu.matmul %1, %7, %cst_8 {dimension_numbers = #tpu.dot_dimension_numbers<[1], [0], [0], [1], [0, 0, 1, 1], [], []>} : vector<16x32xbf16>, vector<32x32xbf16>, vector<16x32xf32> -> vector<16x32xf32>
    %c0_9 = arith.constant 0 : index
    %c0_10 = arith.constant 0 : index
    %9 = vector.load %arg7[%c0_9, %c0_10] : memref<1x32xf32, #tpu.memory_space<vmem>>, vector<1x32xf32>
    %10 = vector.broadcast %9 : vector<1x32xf32> to vector<16x32xf32>
    %11 = arith.addf %8, %10 : vector<16x32xf32>
    %c0_11 = arith.constant 0 : index
    %c0_12 = arith.constant 0 : index
    %12 = vector.load %arg5[%c0_11, %c0_12] : memref<32x32xbf16, #tpu.memory_space<vmem>>, vector<32x32xbf16>
    %cst_13 = arith.constant dense<0.000000e+00> : vector<16x32xf32>
    %13 = tpu.matmul %1, %12, %cst_13 {dimension_numbers = #tpu.dot_dimension_numbers<[1], [0], [0], [1], [0, 0, 1, 1], [], []>} : vector<16x32xbf16>, vector<32x32xbf16>, vector<16x32xf32> -> vector<16x32xf32>
    %c0_14 = arith.constant 0 : index
    %c0_15 = arith.constant 0 : index
    %14 = vector.load %arg8[%c0_14, %c0_15] : memref<1x32xf32, #tpu.memory_space<vmem>>, vector<1x32xf32>
    %15 = vector.broadcast %14 : vector<1x32xf32> to vector<16x32xf32>
    %16 = arith.addf %13, %15 : vector<16x32xf32>
    %17 = arith.negf %6 : vector<16x32xf32>
    %18 = math.exp %17 : vector<16x32xf32>
    %cst_16 = arith.constant 1.000000e+00 : f32
    %19 = vector.broadcast %cst_16 : f32 to vector<16x32xf32>
    %20 = arith.addf %19, %18 : vector<16x32xf32>
    %21 = arith.divf %19, %20 : vector<16x32xf32>
    %22 = math.exp %11 : vector<16x32xf32>
    %23 = arith.mulf %22, %16 : vector<16x32xf32>
    %24 = vector.extract_strided_slice %21 {offsets = [0, 0], sizes = [8, 32], strides = [1, 1]} : vector<16x32xf32> to vector<8x32xf32>
    %25 = vector.extract_strided_slice %21 {offsets = [8, 0], sizes = [8, 32], strides = [1, 1]} : vector<16x32xf32> to vector<8x32xf32>
    %26 = tpu.concatenate %24, %25 in 1 : vector<8x32xf32>, vector<8x32xf32> -> vector<8x64xf32>
    %27 = arith.truncf %26 : vector<8x64xf32> to vector<8x64xbf16>
    %c0_17 = arith.constant 0 : index
    %c0_18 = arith.constant 0 : index
    %c0_19 = arith.constant 0 : index
    %28 = vector.load %arg9[%c0_17, %c0_18, %c0_19] : memref<1x8x64xbf16, #tpu.memory_space<vmem>>, vector<1x8x64xbf16>
    %29 = vector.shape_cast %28 : vector<1x8x64xbf16> to vector<8x64xbf16>
    %30 = vector.shape_cast %27 : vector<8x64xbf16> to vector<1x8x64xbf16>
    tpu.vector_store %arg9[%c0_17, %c0_18, %c0_19], %30 {strides = array<i32>} : memref<1x8x64xbf16, #tpu.memory_space<vmem>>, vector<1x8x64xbf16>,
    %31 = vector.extract_strided_slice %22 {offsets = [0, 0], sizes = [8, 32], strides = [1, 1]} : vector<16x32xf32> to vector<8x32xf32>
    %32 = vector.extract_strided_slice %22 {offsets = [8, 0], sizes = [8, 32], strides = [1, 1]} : vector<16x32xf32> to vector<8x32xf32>
    %33 = tpu.concatenate %31, %32 in 1 : vector<8x32xf32>, vector<8x32xf32> -> vector<8x64xf32>
    %34 = arith.truncf %33 : vector<8x64xf32> to vector<8x64xbf16>
    %c0_20 = arith.constant 0 : index
    %c0_21 = arith.constant 0 : index
    %c0_22 = arith.constant 0 : index
    %35 = vector.load %arg10[%c0_20, %c0_21, %c0_22] : memref<1x8x64xbf16, #tpu.memory_space<vmem>>, vector<1x8x64xbf16>
    %36 = vector.shape_cast %35 : vector<1x8x64xbf16> to vector<8x64xbf16>
    %37 = vector.shape_cast %34 : vector<8x64xbf16> to vector<1x8x64xbf16>
    tpu.vector_store %arg10[%c0_20, %c0_21, %c0_22], %37 {strides = array<i32>} : memref<1x8x64xbf16, #tpu.memory_space<vmem>>, vector<1x8x64xbf16>,
    %38 = vector.extract_strided_slice %23 {offsets = [0, 0], sizes = [8, 32], strides = [1, 1]} : vector<16x32xf32> to vector<8x32xf32>
    %39 = vector.extract_strided_slice %23 {offsets = [8, 0], sizes = [8, 32], strides = [1, 1]} : vector<16x32xf32> to vector<8x32xf32>
    %40 = tpu.concatenate %38, %39 in 1 : vector<8x32xf32>, vector<8x32xf32> -> vector<8x64xf32>
    %41 = arith.truncf %40 : vector<8x64xf32> to vector<8x64xbf16>
    %c0_23 = arith.constant 0 : index
    %c0_24 = arith.constant 0 : index
    %c0_25 = arith.constant 0 : index
    %42 = vector.load %arg11[%c0_23, %c0_24, %c0_25] : memref<1x8x64xbf16, #tpu.memory_space<vmem>>, vector<1x8x64xbf16>
    %43 = vector.shape_cast %42 : vector<1x8x64xbf16> to vector<8x64xbf16>
    %44 = vector.shape_cast %41 : vector<8x64xbf16> to vector<1x8x64xbf16>
    tpu.vector_store %arg11[%c0_23, %c0_24, %c0_25], %44 {strides = array<i32>} : memref<1x8x64xbf16, #tpu.memory_space<vmem>>, vector<1x8x64xbf16>,
    return
  }
  func.func @transform_0(%arg0: i32, %arg1: i32) -> (i32, i32, i32) {
    %c0_i32 = arith.constant 0 : i32
    %c0_i32_0 = arith.constant 0 : i32
    return %arg0, %arg1, %c0_i32 : i32, i32, i32
  }
  func.func @transform_1(%arg0: i32, %arg1: i32) -> (i32, i32) {
    %c0_i32 = arith.constant 0 : i32
    %c0_i32_0 = arith.constant 0 : i32
    %c0_i32_1 = arith.constant 0 : i32
    return %c0_i32, %c0_i32_0 : i32, i32
  }
  func.func @transform_2(%arg0: i32, %arg1: i32) -> (i32, i32) {
    %c0_i32 = arith.constant 0 : i32
    %c0_i32_0 = arith.constant 0 : i32
    %c0_i32_1 = arith.constant 0 : i32
    return %c0_i32, %c0_i32_0 : i32, i32
  }
  func.func @transform_3(%arg0: i32, %arg1: i32) -> (i32, i32) {
    %c0_i32 = arith.constant 0 : i32
    %c0_i32_0 = arith.constant 0 : i32
    %c0_i32_1 = arith.constant 0 : i32
    return %c0_i32, %c0_i32_0 : i32, i32
  }
  func.func @transform_4(%arg0: i32, %arg1: i32) -> (i32, i32) {
    %c0_i32 = arith.constant 0 : i32
    %c0_i32_0 = arith.constant 0 : i32
    %c0_i32_1 = arith.constant 0 : i32
    return %c0_i32, %c0_i32_0 : i32, i32
  }
  func.func @transform_5(%arg0: i32, %arg1: i32) -> (i32, i32) {
    %c0_i32 = arith.constant 0 : i32
    %c0_i32_0 = arith.constant 0 : i32
    %c0_i32_1 = arith.constant 0 : i32
    return %c0_i32, %c0_i32_0 : i32, i32
  }
  func.func @transform_6(%arg0: i32, %arg1: i32) -> (i32, i32) {
    %c0_i32 = arith.constant 0 : i32
    %c0_i32_0 = arith.constant 0 : i32
    %c0_i32_1 = arith.constant 0 : i32
    return %c0_i32, %c0_i32_0 : i32, i32
  }
  func.func @transform_7(%arg0: i32, %arg1: i32) -> (i32, i32, i32) {
    %c0_i32 = arith.constant 0 : i32
    %c0_i32_0 = arith.constant 0 : i32
    return %arg0, %arg1, %c0_i32 : i32, i32, i32
  }
  func.func @transform_8(%arg0: i32, %arg1: i32) -> (i32, i32, i32) {
    %c0_i32 = arith.constant 0 : i32
    %c0_i32_0 = arith.constant 0 : i32
    return %arg0, %arg1, %c0_i32 : i32, i32, i32
  }
  func.func @transform_9(%arg0: i32, %arg1: i32) -> (i32, i32, i32) {
    %c0_i32 = arith.constant 0 : i32
    %c0_i32_0 = arith.constant 0 : i32
    return %arg0, %arg1, %c0_i32 : i32, i32, i32
  }
}

</mosaic_0001>

<bundles_post_ra>
// kernel: tpu_custom_call.1
= control target key start
LH: loop header
LB: loop body
LE: loop exit
PB: predicated region body
PF: predicated region fallthrough
CT: control target
= control target key end

     0   :  { %15 = vsyncpa [#allocation3], 0  ;;  %s724_s0 = inlined_call_operand.hbm [shape: bf16[2,8,32], index: 0, kind: input, shape index: {}]   ;;  %s725_s1 = inlined_call_operand.hbm [shape: bf16[32,32], index: 1, kind: input, shape index: {}]   ;;  %s726_s2 = inlined_call_operand.hbm [shape: bf16[32,32], index: 2, kind: input, shape index: {}]   ;;  %s727_s3 = inlined_call_operand.hbm [shape: bf16[32,32], index: 3, kind: input, shape index: {}]   ;;  %s728_s4 = inlined_call_operand.vmem [shape: f32[1,32], index: 4, kind: input, shape index: {}]   ;;  %s729_s5 = inlined_call_operand.vmem [shape: f32[1,32], index: 5, kind: input, shape index: {}]   ;;  %s730_s6 = inlined_call_operand.vmem [shape: f32[1,32], index: 6, kind: input, shape index: {}]   ;;  %s731_s7 = inlined_call_operand.hbm [shape: bf16[1,8,64], index: 7, kind: output, shape index: {0}]   ;;  %s732_s8 = inlined_call_operand.hbm [shape: bf16[1,8,64], index: 8, kind: output, shape index: {1}]   ;;  %s733_s9 = inlined_call_operand.hbm [shape: bf16[1,8,64], index: 9, kind: output, shape index: {2}]  }
   0x1   :  { %16 = vsyncpa [#allocation6], 0 }
   0x2   :  { %17 = vsyncpa [#allocation9], 0 }
   0x3   :  { %18 = vsyncpa [#allocation4], 0 }
   0x4   :  { %19 = vsyncpa [#allocation12], 0  ;;  %s608_s30 = smov [#allocation5]   ;;  %s609_s11 = smov [#allocation2]  }
   0x5   :  { %s37_s10 = sshll.u32 %s608_s30, 4  ;;  %s25_s12 = sshll.u32 %s609_s11, 4  ;;  %s38_s10 = int_to_ptr.vmem [resolvable:$true] %s37_s10  ;;  %s26_s12 = int_to_ptr.vmem [resolvable:$true] %s25_s12 }
   0x6   :  { %s466_s13 = scalar_lea.vmem %s38_s10, 256  ;;  %p471_p1 = scmp.lt.s32.totalorder %s38_s10, %s38_s10 }
   0x7   :  { %p467_p0 = scmp.ne.s32.totalorder %s38_s10, %s466_s13  ;;  %p472_p2 = scmp.lt.s32.totalorder %s466_s13, %s466_s13 }
   0x9   :  { %p473_p3 = por %p472_p2, %p471_p1 }
   0xb   :  { %p474_p4 = pnand %p473_p3, %p467_p0 }
   0xd   :  { %477 = shalt.err (!%p474_p4)
}
   0xe   :  { %s610_s14 = smov 64   ;;  %s611_s15 = smov 4  }
   0xf   :  { %43 = dma.hbm_to_vmem [thread:$0]  %s725_s1, 256, %s38_s10, [#allocation6], %s610_s14, %s610_s14, %s611_s15  }
  0x10   :  { %s486_s18 = scalar_lea.vmem %s26_s12, 128  ;;  %p491_p6 = scmp.lt.s32.totalorder %s26_s12, %s26_s12 }
  0x11   :  { %p487_p5 = scmp.ne.s32.totalorder %s26_s12, %s486_s18  ;;  %p492_p7 = scmp.lt.s32.totalorder %s486_s18, %s486_s18 }
  0x13   :  { %p493_p8 = por %p492_p7, %p491_p6 }
  0x15   :  { %p494_p9 = pnand %p493_p8, %p487_p5 }
  0x17   :  { %497 = shalt.err (!%p494_p9)
}
  0x18   :  { %31 = dma.hbm_to_vmem [thread:$0]  %s724_s0, 128, %s26_s12, [#allocation3], %s610_s14, %s610_s14, %s611_s15  }
  0x19   :  { %s612_s21 = smov [#allocation7]   ;;  %s613_s23 = smov [#allocation8]  }
  0x1a   :  { %s49_s22 = sshll.u32 %s612_s21, 4  ;;  %s61_s24 = sshll.u32 %s613_s23, 4  ;;  %s50_s22 = int_to_ptr.vmem [resolvable:$true] %s49_s22  ;;  %s62_s24 = int_to_ptr.vmem [resolvable:$true] %s61_s24 }
  0x1b   :  { %s506_s1 = scalar_lea.vmem %s50_s22, 256  ;;  %p511_p11 = scmp.lt.s32.totalorder %s50_s22, %s50_s22 }
  0x1c   :  { %p507_p10 = scmp.ne.s32.totalorder %s50_s22, %s506_s1  ;;  %p512_p12 = scmp.lt.s32.totalorder %s506_s1, %s506_s1 }
  0x1e   :  { %p513_p13 = por %p512_p12, %p511_p11 }
  0x20   :  { %p514_p0 = pnand %p513_p13, %p507_p10 }
  0x22   :  { %517 = shalt.err (!%p514_p0)
}
  0x23   :  { %55 = dma.hbm_to_vmem [thread:$0]  %s726_s2, 256, %s50_s22, [#allocation6], %s610_s14, %s610_s14, %s611_s15  }
  0x24   :  { %s526_s0 = scalar_lea.vmem %s62_s24, 256  ;;  %p531_p2 = scmp.lt.s32.totalorder %s62_s24, %s62_s24 }
  0x25   :  { %p527_p1 = scmp.ne.s32.totalorder %s62_s24, %s526_s0  ;;  %p532_p3 = scmp.lt.s32.totalorder %s526_s0, %s526_s0 }
  0x27   :  { %p533_p4 = por %p532_p3, %p531_p2 }
  0x29   :  { %p534_p5 = pnand %p533_p4, %p527_p1 }
  0x2b   :  { %537 = shalt.err (!%p534_p5)
}
  0x2c   :  { %67 = dma.hbm_to_vmem [thread:$0]  %s727_s3, 256, %s62_s24, [#allocation9], %s610_s14, %s610_s14, %s611_s15  }
  0x2d   :  { %598 = dma.done.wait [#allocation3], 128  }
  0x2e   :  { %599 = vsyncadd [#allocation3], 4294967168 }
  0x2f   :  { %600 = dma.done.wait [#allocation6], 512  }
  0x30   :  { %601 = vsyncadd [#allocation6], 4294966784 }
  0x31   :  { %602 = dma.done.wait [#allocation9], 256  }
  0x32   :  { %603 = vsyncadd [#allocation9], 4294967040  ;;  %v614_v0 = vmov 0.0   ;;  %vm615_vm0 = vmmov 0   ;;  %v439_v1 = vld [vmem:[#allocation5 + $0x8] sm:$0xff]   ;;  %v440_v2 = vld [vmem:[#allocation5] sm:$0xff]  }
  0x33   :  { %398 = vmatprep.subr.bf16.mxu0 %v614_v0  ;;  %402 = vmatprep.mubr.msk.bf16.mxu0 %vm615_vm0, %v614_v0  ;;  %v442_v3 = vld [vmem:[#allocation7 + $0x8] sm:$0xff]   ;;  %v443_v5 = vld [vmem:[#allocation7] sm:$0xff]   ;;  %vm117_vm1 = vcmask 261120   ;;  %v444_v6 = vld [vmem:[#allocation8 + $0x8] sm:$0xff]   ;;  %s618_s12 = smov [#allocation10]   ;;  %vm314_vm2 = vcmask 519168  }
  0x34   :  { %406 = vmatprep.subr.bf16.mxu1 %v614_v0  ;;  %410 = vmatprep.mubr.msk.bf16.mxu1 %vm615_vm0, %v614_v0  ;;  %v441_v4 = vld [vmem:[#allocation2] sm:$0xff]   ;;  %v445_v7 = vld [vmem:[#allocation8] sm:$0xff]   ;;  %s336_s13 = sshll.u32 %s618_s12, 4  ;;  %s619_s14 = smov [#allocation13]   ;;  %s337_s13 = int_to_ptr.vmem [resolvable:$true] %s336_s13 }
  0x35   :  { %399 = vmatpush3.bf16.msra.mxu0 %v439_v1  ;;  %407 = vmatpush3.bf16.msra.mxu1 %v442_v3  ;;  %v374_v8 = vld [vmem:[%s728_s4] ss:$0 sm:$0xff]  ;;  %s616_s4 = smov 32   ;;  %s356_s15 = sshll.u32 %s619_s14, 4  ;;  %s357_s15 = int_to_ptr.vmem [resolvable:$true] %s356_s15 }
  0x36   :  { %400 = vmatprep.subr.bf16.mxu0 %v614_v0  ;;  %408 = vmatprep.subr.bf16.mxu1 %v614_v0  ;;  %v379_v11 = vld [vmem:[%s729_s5] ss:$0 sm:$0xff]  ;;  %s617_s5 = smov [#allocation11]  }
  0x37   :  { %v383_v20 = vld [vmem:[%s730_s6] ss:$0 sm:$0xff]  ;;  %s346_s6 = sshll.u32 %s617_s5, 4  ;;  %s347_s6 = int_to_ptr.vmem [resolvable:$true] %s346_s6 }
  0x38   :  { %s538_s16 = scalar_lea.vmem %s347_s6, 64  ;;  %p543_p7 = scmp.lt.s32.totalorder %s347_s6, %s347_s6 }
  0x39   :  { %401 = vmatpush3.bf16.msra.mxu0 %v440_v2  ;;  %409 = vmatpush3.bf16.msra.mxu1 %v443_v5  ;;  %p539_p6 = scmp.ne.s32.totalorder %s347_s6, %s538_s16  ;;  %p544_p8 = scmp.lt.s32.totalorder %s538_s16, %s538_s16 }
  0x3a   :  { %414 = vmatprep.subr.bf16.mxu0 %v614_v0 }
  0x3b   :  { %p545_p9 = por %p544_p8, %p543_p7 }
  0x3c   :  { %403 = vmatmul.mubr.msk.bf16.vlgmr.msra.gmra.mxu0 %vm117_vm1, %v441_v4  ;;  %411 = vmatmul.mubr.msk.bf16.vlgmr.msra.gmra.mxu1 %vm117_vm1, %v441_v4 }
  0x3d   :  { %415 = vmatpush3.bf16.msra.mxu0 %v444_v6  ;;  %418 = vmatprep.mubr.msk.bf16.mxu0 %vm615_vm0, %v614_v0  ;;  %p546_p10 = pnand %p545_p9, %p539_p6 }
  0x3e   :  { %416 = vmatprep.subr.bf16.mxu0 %v614_v0 }
  0x41   :  { %417 = vmatpush3.bf16.msra.mxu0 %v445_v7 }
  0x44   :  { %419 = vmatmul.mubr.msk.bf16.vlgmr.msra.gmra.mxu0 %vm117_vm1, %v441_v4 }
  0xfc   :  { %v155_v9 = vpop.f32.mrf.mxu0  ;;  %v219_v13 = vpop.f32.mrf.mxu1 }
  0xfd   :  { %v156_v10 = vadd.f32 %v374_v8, %v155_v9  ;;  %v220_v15 = vadd.f32 %v379_v11, %v219_v13 }
  0xfe   :  { %v404_v12 = vpop.f32.mrf.mxu0  ;;  %v412_v17 = vpop.f32.mrf.mxu1 }
  0xff   :  { %v302_v19 = vmul.f32 1.442695, %v220_v15  ;;  %v387_v40 = vmul.f32 -1.442695, %v156_v10 }
 0x100   :  { %v158_v14 = vpop.f32.mrf.mxu0  ;;  %v222_v22 = vpop.f32.mrf.mxu1 }
 0x101   :  { %v159_v16 = vadd.f32 %v374_v8, %v158_v14  ;;  %446 = vpow2.f32 %v302_v19  ;;  %v223_v29 = vadd.f32 %v379_v11, %v222_v22 }
 0x102   :  { %v405_v18 = vpop.f32.mrf.mxu0  ;;  %v413_v24 = vpop.f32.mrf.mxu1 }
 0x103   :  { %v388_v21 = vmul.f32 -1.442695, %v159_v16  ;;  %v304_v30 = vmul.f32 1.442695, %v223_v29 }
 0x104   :  { %v283_v23 = vpop.f32.mrf.mxu0 }
 0x105   :  { %448 = vpow2.f32 %v388_v21  ;;  %v284_v25 = vadd.f32 %v383_v20, %v283_v23 }
 0x106   :  { %v420_v26 = vpop.f32.mrf.mxu0  ;;  %450 = vpow2.f32 %v304_v30 }
 0x108   :  { %v286_v27 = vpop.f32.mrf.mxu0 }
 0x109   :  { %v287_v37 = vadd.f32 %v383_v20, %v286_v27 }
 0x10a   :  { %v421_v28 = vpop.f32.mrf.mxu0 }
 0x10e   :  { %v447_v31 = vpop.eup %446 }
 0x10f   :  { %v306_v33 = vmul.f32 %v447_v31, %v284_v25 }
 0x112   :  { %v449_v32 = vpop.eup %448 }
 0x113   :  { %v297_v34 = vadd.f32 1.0, %v449_v32  ;;  %v451_v35 = vpop.eup %450 }
 0x114   :  { %v307_v39 = vmul.f32 %v451_v35, %v287_v37 }
 0x115   :  { %452 = vrcp.f32 %v297_v34 }
 0x116   :  { %454 = vpow2.f32 %v387_v40 }
 0x122   :  { %v453_v36 = vpop.eup %452 }
 0x123   :  { %v434_v38 = vpack.i.bf16 %v453_v36, %v451_v35  ;;  %v455_v41 = vpop.eup %454 }
 0x124   :  { %v296_v42 = vadd.f32 1.0, %v455_v41 }
 0x125   :  { %435 = vrot.lane.b32.xlu0 %v434_v38, %s616_s4 }
 0x126   :  { %456 = vrcp.f32 %v296_v42 }
 0x129   :  { %324 = vrot.lane.b32.xlu0 %v307_v39, %s616_s4 }
 0x133   :  { %v457_v46 = vpop.eup %456 }
 0x197   :  { %v436_v43 = vpop.permute.xlu0 %435 }
 0x198   :  { %v438_v44 = vunpack.i.h.bf16 %v436_v43  ;;  %v437_v45 = vunpack.i.l.bf16 %v436_v43 }
 0x19a   :  { %v312_v47 = vsel %vm117_vm1, %v457_v46, %v438_v44  ;;  %v320_v48 = vsel %vm117_vm1, %v447_v31, %v437_v45 }
 0x19b   :  { %v325_v49 = vpop.permute.xlu0 %324  ;;  %v321_v50 = vpack.c.bf16 %v320_v48, %v320_v48  ;;  %v313_v51 = vpack.c.bf16 %v312_v47, %v312_v47 }
 0x19c   :  { %v327_v52 = vsel %vm117_vm1, %v306_v33, %v325_v49 }
 0x19d   :  { %v328_v53 = vpack.c.bf16 %v327_v52, %v327_v52  ;;  %322 = vst.msk [vmem:[#allocation11] sm:$0xf] %vm314_vm2, %v321_v50  ;;  %315 = vst.msk [vmem:[#allocation10] sm:$0xf] %vm314_vm2, %v313_v51 }
 0x19e   :  { %549 = shalt.err (!%p546_p10)
}
 0x19f   :  { %349 = dma.vmem_to_hbm [thread:$0]  %s347_s6, 64, %s732_s8, [#allocation12]   ;;  %329 = vst.msk [vmem:[#allocation13] sm:$0xf] %vm314_vm2, %v328_v53 }
 0x1a0   :  { %s558_s19 = scalar_lea.vmem %s337_s13, 64  ;;  %p563_p12 = scmp.lt.s32.totalorder %s337_s13, %s337_s13 }
 0x1a1   :  { %p559_p11 = scmp.ne.s32.totalorder %s337_s13, %s558_s19  ;;  %p564_p13 = scmp.lt.s32.totalorder %s558_s19, %s558_s19 }
 0x1a3   :  { %p565_p0 = por %p564_p13, %p563_p12 }
 0x1a5   :  { %p566_p1 = pnand %p565_p0, %p559_p11 }
 0x1a7   :  { %569 = shalt.err (!%p566_p1)
}
 0x1a8   :  { %339 = dma.vmem_to_hbm [thread:$0]  %s337_s13, 64, %s731_s7, [#allocation4]  }
 0x1a9   :  { %s578_s22 = scalar_lea.vmem %s357_s15, 64  ;;  %p583_p3 = scmp.lt.s32.totalorder %s357_s15, %s357_s15 }
 0x1aa   :  { %p579_p2 = scmp.ne.s32.totalorder %s357_s15, %s578_s22  ;;  %p584_p4 = scmp.lt.s32.totalorder %s578_s22, %s578_s22 }
 0x1ac   :  { %p585_p5 = por %p584_p4, %p583_p3 }
 0x1ae   :  { %p586_p6 = pnand %p585_p5, %p579_p2 }
 0x1b0   :  { %589 = shalt.err (!%p586_p6)
}
 0x1b1   :  { %359 = dma.vmem_to_hbm [thread:$0]  %s357_s15, 64, %s733_s9, [#allocation12]  }
 0x1b2   :  { %604 = dma.done.wait [#allocation4], 64  }
 0x1b3   :  { %605 = vsyncadd [#allocation4], 4294967232 }
 0x1b4   :  { %606 = dma.done.wait [#allocation12], 128  }
 0x1b5   :  { %607 = vsyncadd [#allocation12], 4294967168 }
 0x1b6   :  { %369 = vsyncpa [#allocation3], 1 }
 0x1b7   :  { %370 = vsyncpa [#allocation6], 1 }
 0x1b8   :  { %371 = vsyncpa [#allocation9], 1 }
 0x1b9   :  { %372 = vsyncpa [#allocation4], 1 }
 0x1ba   :  { %373 = vsyncpa [#allocation12], 1 }

</bundles_post_ra>
